<compile_context>
chip_gen: v6e
topology: v6e:2x2x1
jax: 0.10.0
libtpu: 0.0.40
codegen_flags: <defaults>
</compile_context>

<pallas_src>
import math
import functools

import jax
import jax.numpy as jnp
from jax import lax
from jax.experimental import pallas as pl
from jax.experimental.pallas import tpu as pltpu


def _round_up(x, m):
    return ((x + m - 1) // m) * m


def _cdiv(a, b):
    return -(-a // b)


_VMEM_BUDGET = 40 * 1024 * 1024          # conservative; leaves headroom inside v7x's 64 MiB/TC
_VMEM_LIMIT_CAP = 48 * 1024 * 1024


def _vmem_bytes(TB, TD, Fp, Cp, op_bytes):
    """Approximate double-buffered VMEM footprint for one grid step."""
    return (2 * TB * Fp * op_bytes          # x tile
            + 2 * TD * Fp * op_bytes        # encoder-weight tile
            + 2 * 8 * TD * 4                # sin(bias) tile (sublane-padded)
            + 2 * TD * Cp * op_bytes        # class-weight tile
            + 2 * 8 * Cp * 4                # 1/class-norm (resident)
            + 2 * TB * Cp * 4               # output tile (f32)
            + TB * 128 * 4)                 # ||enc||^2 accumulator (lane-padded)


def _select_tiles(B, Dp, Fp, Cp, batch_tile, dim_tile, op_bytes, batch_granule):
    g = batch_granule
    B_g = _round_up(B, g)
    # >= 2 batch tiles when there is real work, so the "parallel" axis can shard
    # across both v7x TensorCores (irrelevant on v5e/v6e single-TC chips).
    n_b = max(_cdiv(B_g, batch_tile), 2 if B_g >= 256 else 1)
    TB = _round_up(_cdiv(B_g, n_b), g)

    # TD: largest multiple of 128 that divides Dp (zero padding waste) and fits budget.
    k = Dp // 128
    cands = sorted((d * 128 for d in range(1, k + 1) if k % d == 0), reverse=True)
    TD = 128
    for cand in cands:
        if cand <= max(dim_tile, 128) and _vmem_bytes(TB, cand, Fp, Cp, op_bytes) <= _VMEM_BUDGET:
            TD = cand
            break
    while _vmem_bytes(TB, TD, Fp, Cp, op_bytes) > _VMEM_BUDGET and TB > g:
        TB = _round_up(TB // 2, g)
    Bp = _round_up(B_g, TB)
    return TB, Bp, TD


def neuralhd_kernel(x_ref, w_enc_ref, sin_bias_ref, w_cls_t_ref, inv_cls_norm_ref,
                    out_ref, enc_sq_acc):
    d = pl.program_id(1)

    @pl.when(d == 0)
    def _init():
        out_ref[...] = jnp.zeros_like(out_ref)
        enc_sq_acc[...] = jnp.zeros_like(enc_sq_acc)

    # arg = 2*proj + bias  (factor 2 and bias already folded into the padded encoder
    # weights / the ones column of x), NT matmul feeding the MXU directly.
    arg = lax.dot_general(
        x_ref[...], w_enc_ref[...],
        dimension_numbers=(((1,), (1,)), ((), ())),
        preferred_element_type=jnp.float32)                            # [TB, TD] f32

    # enc' = sin(2p + b) - sin(b) == 2 * cos(p+b) * sin(p); the global factor 2 cancels
    # in the cosine similarity, so it is dropped. One EUP transcendental per element.
    enc = jnp.sin(arg) - sin_bias_ref[...]                             # [TB, TD] f32

    # Class dot-products accumulate directly into the resident output block;
    # pre-transposed class weights give a plain (k, n) contraction.
    out_ref[...] += lax.dot_general(
        enc.astype(w_cls_t_ref.dtype), w_cls_t_ref[...],
        dimension_numbers=(((1,), (0,)), ((), ())),
        preferred_element_type=jnp.float32)                            # [TB, Cp]
    enc_sq_acc[...] += jnp.sum(enc * enc, axis=-1, keepdims=True)      # [TB, 1]

    @pl.when(d == pl.num_programs(1) - 1)
    def _finalize():
        inv_enc_norm = lax.rsqrt(jnp.maximum(enc_sq_acc[...], 1e-12))  # [TB, 1]
        out_ref[...] = out_ref[...] * inv_enc_norm * inv_cls_norm_ref[...]


def neuralhd_prepare(w_enc, bias, w_cls, *, use_bf16_matmul=False):
    """One-time weight preparation (pad, pre-scale, fold bias, pre-transpose, norms).

    Done outside the per-call path so the full D*F / C*D weights are not re-read and
    re-written in HBM on every forward call.
    """
    D, F = w_enc.shape
    C, _ = w_cls.shape
    f32 = jnp.float32
    op_dtype = jnp.bfloat16 if use_bf16_matmul else f32

    Fp = _round_up(F + 1, 128)              # +1 column carries the encoder bias
    Dp = _round_up(D, 128)
    Cp = _round_up(C, 128)

    # Encoder weights: rows pre-scaled by 2, bias folded into column F.
    w_enc_p = jnp.zeros((Dp, Fp), f32)
    w_enc_p = w_enc_p.at[:D, :F].set(2.0 * w_enc.astype(f32))
    w_enc_p = w_enc_p.at[:D, F].set(bias.reshape(-1).astype(f32))
    w_enc_p = w_enc_p.astype(op_dtype)

    # sin(bias), consistent with the (possibly bf16-rounded) bias actually used above.
    bias_used = w_enc_p[:, F].astype(f32)
    sin_bias_p = jnp.sin(bias_used).reshape(1, Dp)

    # Class weights pre-transposed to [Dp, Cp]; 1/||w_c|| hoisted out of the kernel.
    w_cls_t = jnp.zeros((Dp, Cp), f32).at[:D, :C].set(w_cls.astype(f32).T)
    cls_norm = jnp.sqrt(jnp.sum(w_cls_t * w_cls_t, axis=0, keepdims=True))   # [1, Cp]
    inv_cls_norm = 1.0 / jnp.maximum(cls_norm, 1e-8)
    w_cls_t = w_cls_t.astype(op_dtype)

    return w_enc_p, sin_bias_p, w_cls_t, inv_cls_norm


@functools.partial(jax.jit, static_argnames=("n_classes", "batch_tile", "dim_tile"))
def neuralhd_apply(x, w_enc_p, sin_bias_p, w_cls_t, inv_cls_norm, *,
                   n_classes, batch_tile=512, dim_tile=1024):
    """NeuralHD forward: cosine similarities [B, n_classes] of encoded x vs centroids."""
    B, F = x.shape
    Dp, Fp = w_enc_p.shape
    _, Cp = w_cls_t.shape
    op_dtype = w_enc_p.dtype
    op_bytes = jnp.dtype(op_dtype).itemsize
    batch_granule = 16 if op_bytes == 2 else 8

    TB, Bp, TD = _select_tiles(B, Dp, Fp, Cp, batch_tile, dim_tile, op_bytes, batch_granule)
    grid = (Bp // TB, Dp // TD)

    vmem_need = _vmem_bytes(TB, TD, Fp, Cp, op_bytes)
    vmem_limit = int(min(_VMEM_LIMIT_CAP, max(vmem_need + (4 << 20), 32 << 20)))

    # Per-call padding only touches x: zero-pad features; the ones column at index F
    # carries the folded bias (padded batch rows then encode to exactly zero).
    xp = jnp.zeros((Bp, Fp), jnp.float32)
    xp = xp.at[:B, :F].set(x.astype(jnp.float32))
    xp = xp.at[:, F].set(1.0)
    xp = xp.astype(op_dtype)

    out_padded = pl.pallas_call(
        neuralhd_kernel,
        out_shape=jax.ShapeDtypeStruct((Bp, Cp), jnp.float32),
        grid_spec=pltpu.PrefetchScalarGridSpec(
            num_scalar_prefetch=0,
            grid=grid,
            in_specs=[
                pl.BlockSpec((TB, Fp), lambda i, d: (i, 0)),    # x tile (per batch step)
                pl.BlockSpec((TD, Fp), lambda i, d: (d, 0)),    # encoder weights, streamed over D
                pl.BlockSpec((1, TD), lambda i, d: (0, d)),     # sin(bias) tile
                pl.BlockSpec((TD, Cp), lambda i, d: (d, 0)),    # class weights (pre-transposed)
                pl.BlockSpec((1, Cp), lambda i, d: (0, 0)),     # 1/class-norm (resident)
            ],
            out_specs=pl.BlockSpec((TB, Cp), lambda i, d: (i, 0)),
            scratch_shapes=[pltpu.VMEM((TB, 1), jnp.float32)],  # ||enc||^2 accumulator
        ),
        compiler_params=pltpu.CompilerParams(
            dimension_semantics=("parallel", "arbitrary"),
            vmem_limit_bytes=vmem_limit,
        ),
    )(xp, w_enc_p, sin_bias_p, w_cls_t, inv_cls_norm)

    return out_padded[:B, :n_classes]


def neuralhd_forward(x, w_enc, bias, w_cls, *, use_bf16_matmul=False,
                     batch_tile=512, dim_tile=1024):
    """Convenience one-shot wrapper (prepare + apply)."""
    params = neuralhd_prepare(w_enc, bias, w_cls, use_bf16_matmul=use_bf16_matmul)
    return neuralhd_apply(x, *params, n_classes=w_cls.shape[0],
                          batch_tile=batch_tile, dim_tile=dim_tile)


def neuralhd_reference(x, w_enc, bias, w_cls):
    hi = lax.Precision.HIGHEST
    proj = jnp.dot(x, w_enc.T, precision=hi)
    enc = jnp.cos(proj + bias) * jnp.sin(proj)
    dots = jnp.dot(enc, w_cls.T, precision=hi)
    enc_norm = jnp.sqrt(jnp.sum(enc * enc, axis=-1, keepdims=True))
    cls_norm = jnp.sqrt(jnp.sum(w_cls * w_cls, axis=-1, keepdims=True))
    mag = jnp.maximum(enc_norm * cls_norm.T, 1e-8)
    return dots / mag


if __name__ == "__main__":
    # Small, NeuralHD-consistent shapes.
    batch = 8
    n_features = 32
    n_dimensions = 256
    n_classes = 8

    key = jax.random.PRNGKey(0)
    kx, kw, kb, kc = jax.random.split(key, 4)

    # encoder.weight ~ Normal(0,1), encoder.bias ~ Uniform(0, 2*pi); torchhd's Centroid
    # starts at zeros -- use random values so cosine similarity is non-degenerate here.
    x = jax.random.normal(kx, (batch, n_features), dtype=jnp.float32)
    w_enc = jax.random.normal(kw, (n_dimensions, n_features), dtype=jnp.float32)
    bias = jax.random.uniform(kb, (1, n_dimensions), dtype=jnp.float32,
                              minval=0.0, maxval=2.0 * math.pi)
    w_cls = jax.random.normal(kc, (n_classes, n_dimensions), dtype=jnp.float32)

    ref = neuralhd_reference(x, w_enc, bias, w_cls)

    # Exact path (f32 MXU operands): matches the f32 reference tightly.
    params32 = neuralhd_prepare(w_enc, bias, w_cls, use_bf16_matmul=False)
    out32 = jax.block_until_ready(neuralhd_apply(x, *params32, n_classes=n_classes))
    assert out32.shape == (batch, n_classes)
    assert jnp.allclose(out32, ref, atol=1e-4, rtol=1e-4), "f32 path mismatch vs reference"

    # Fast path (bf16 operands, f32 accumulate): ~3x MXU throughput, looser tolerance.
    params16 = neuralhd_prepare(w_enc, bias, w_cls, use_bf16_matmul=True)
    out16 = jax.block_until_ready(neuralhd_apply(x, *params16, n_classes=n_classes))
    assert out16.shape == (batch, n_classes)
    assert jnp.allclose(out16, ref, atol=3e-2, rtol=3e-2), "bf16 path mismatch vs reference"

    print("KERNEL_OK")
</pallas_src>

<mosaic_0001>
module attributes {stable_mosaic.version = 11 : i64} {
  func.func @neuralhd_kernel(%arg0: i32, %arg1: i32, %arg2: memref<8x128xf32, #tpu.memory_space<vmem>>, %arg3: memref<256x128xf32, #tpu.memory_space<vmem>>, %arg4: memref<1x256xf32, #tpu.memory_space<vmem>>, %arg5: memref<256x128xf32, #tpu.memory_space<vmem>>, %arg6: memref<1x128xf32, #tpu.memory_space<vmem>>, %arg7: memref<8x128xf32, #tpu.memory_space<vmem>>, %arg8: memref<8x1xf32, #tpu.memory_space<vmem>>) attributes {dimension_semantics = [#tpu.dimension_semantics<parallel>, #tpu.dimension_semantics<arbitrary>], iteration_bounds = array<i64: 1, 1>, scalar_prefetch = 0 : i64, scratch_operands = 1 : i64, tpu.core_type = #tpu.core_type<tc>, window_params = [{transform_indices = @transform_0, window_bounds = array<i64: 8, 128>}, {transform_indices = @transform_1, window_bounds = array<i64: 256, 128>}, {transform_indices = @transform_2, window_bounds = array<i64: 1, 256>}, {transform_indices = @transform_3, window_bounds = array<i64: 256, 128>}, {pipeline_mode = #tpu.pipeline_mode<synchronous>, transform_indices = @transform_4, window_bounds = array<i64: 1, 128>}, {transform_indices = @transform_5, window_bounds = array<i64: 8, 128>}]} {
    %c0_i32 = arith.constant 0 : i32
    %0 = arith.cmpi eq, %arg1, %c0_i32 : i32
    %1 = arith.extui %0 : i1 to i32
    %c0_i32_0 = arith.constant 0 : i32
    %2 = arith.cmpi ne, %1, %c0_i32_0 : i32
    scf.if %2 {
      %cst_20 = arith.constant 0.000000e+00 : f32
      %24 = vector.broadcast %cst_20 : f32 to vector<8x128xf32>
      %c0_21 = arith.constant 0 : index
      %c0_22 = arith.constant 0 : index
      %25 = vector.load %arg7[%c0_21, %c0_22] : memref<8x128xf32, #tpu.memory_space<vmem>>, vector<8x128xf32>
      tpu.vector_store %arg7[%c0_21, %c0_22], %24 {strides = array<i32>} : memref<8x128xf32, #tpu.memory_space<vmem>>, vector<8x128xf32>,
      %cst_23 = arith.constant 0.000000e+00 : f32
      %26 = vector.broadcast %cst_23 : f32 to vector<8x1xf32>
      %c0_24 = arith.constant 0 : index
      %c0_25 = arith.constant 0 : index
      %27 = vector.load %arg8[%c0_24, %c0_25] : memref<8x1xf32, #tpu.memory_space<vmem>>, vector<8x1xf32>
      tpu.vector_store %arg8[%c0_24, %c0_25], %26 {strides = array<i32>} : memref<8x1xf32, #tpu.memory_space<vmem>>, vector<8x1xf32>,
    } else {
    }
    %c0 = arith.constant 0 : index
    %c0_1 = arith.constant 0 : index
    %3 = vector.load %arg2[%c0, %c0_1] : memref<8x128xf32, #tpu.memory_space<vmem>>, vector<8x128xf32>
    %c0_2 = arith.constant 0 : index
    %c0_3 = arith.constant 0 : index
    %4 = vector.load %arg3[%c0_2, %c0_3] : memref<256x128xf32, #tpu.memory_space<vmem>>, vector<256x128xf32>
    %cst = arith.constant dense<0.000000e+00> : vector<8x256xf32>
    %5 = tpu.matmul %3, %4, %cst {dimension_numbers = #tpu.dot_dimension_numbers<[1], [1], [0], [0], [0, 0, 1, 0], [], []>} : vector<8x128xf32>, vector<256x128xf32>, vector<8x256xf32> -> vector<8x256xf32>
    %6 = math.sin %5 : vector<8x256xf32>
    %c0_4 = arith.constant 0 : index
    %c0_5 = arith.constant 0 : index
    %7 = vector.load %arg4[%c0_4, %c0_5] : memref<1x256xf32, #tpu.memory_space<vmem>>, vector<1x256xf32>
    %8 = vector.broadcast %7 : vector<1x256xf32> to vector<8x256xf32>
    %9 = arith.subf %6, %8 : vector<8x256xf32>
    %c0_6 = arith.constant 0 : index
    %c0_7 = arith.constant 0 : index
    %10 = vector.load %arg7[%c0_6, %c0_7] : memref<8x128xf32, #tpu.memory_space<vmem>>, vector<8x128xf32>
    %c0_8 = arith.constant 0 : index
    %c0_9 = arith.constant 0 : index
    %11 = vector.load %arg5[%c0_8, %c0_9] : memref<256x128xf32, #tpu.memory_space<vmem>>, vector<256x128xf32>
    %cst_10 = arith.constant dense<0.000000e+00> : vector<8x128xf32>
    %12 = tpu.matmul %9, %11, %cst_10 {dimension_numbers = #tpu.dot_dimension_numbers<[1], [0], [0], [1], [0, 0, 1, 1], [], []>} : vector<8x256xf32>, vector<256x128xf32>, vector<8x128xf32> -> vector<8x128xf32>
    %13 = arith.addf %10, %12 : vector<8x128xf32>
    %c0_11 = arith.constant 0 : index
    %c0_12 = arith.constant 0 : index
    %14 = vector.load %arg7[%c0_11, %c0_12] : memref<8x128xf32, #tpu.memory_space<vmem>>, vector<8x128xf32>
    tpu.vector_store %arg7[%c0_11, %c0_12], %13 {strides = array<i32>} : memref<8x128xf32, #tpu.memory_space<vmem>>, vector<8x128xf32>,
    %c0_13 = arith.constant 0 : index
    %c0_14 = arith.constant 0 : index
    %15 = vector.load %arg8[%c0_13, %c0_14] : memref<8x1xf32, #tpu.memory_space<vmem>>, vector<8x1xf32>
    %16 = arith.mulf %9, %9 : vector<8x256xf32>
    %cst_15 = arith.constant dense<0.000000e+00> : vector<8xf32>
    %17 = vector.multi_reduction <add>, %16, %cst_15 [1] : vector<8x256xf32> to vector<8xf32>
    %18 = vector.shape_cast %17 : vector<8xf32> to vector<8x1xf32>
    %19 = arith.addf %15, %18 : vector<8x1xf32>
    %c0_16 = arith.constant 0 : index
    %c0_17 = arith.constant 0 : index
    %20 = vector.load %arg8[%c0_16, %c0_17] : memref<8x1xf32, #tpu.memory_space<vmem>>, vector<8x1xf32>
    tpu.vector_store %arg8[%c0_16, %c0_17], %19 {strides = array<i32>} : memref<8x1xf32, #tpu.memory_space<vmem>>, vector<8x1xf32>,
    %c0_i32_18 = arith.constant 0 : i32
    %21 = arith.cmpi eq, %arg1, %c0_i32_18 : i32
    %22 = arith.extui %21 : i1 to i32
    %c0_i32_19 = arith.constant 0 : i32
    %23 = arith.cmpi ne, %22, %c0_i32_19 : i32
    scf.if %23 {
      %c0_20 = arith.constant 0 : index
      %c0_21 = arith.constant 0 : index
      %24 = vector.load %arg8[%c0_20, %c0_21] : memref<8x1xf32, #tpu.memory_space<vmem>>, vector<8x1xf32>
      %cst_22 = arith.constant 9.99999996E-13 : f32
      %25 = vector.broadcast %cst_22 : f32 to vector<8x1xf32>
      %26 = arith.maximumf %24, %25 : vector<8x1xf32>
      %27 = math.rsqrt %26 : vector<8x1xf32>
      %c0_23 = arith.constant 0 : index
      %c0_24 = arith.constant 0 : index
      %28 = vector.load %arg7[%c0_23, %c0_24] : memref<8x128xf32, #tpu.memory_space<vmem>>, vector<8x128xf32>
      %29 = vector.broadcast %27 : vector<8x1xf32> to vector<8x128xf32>
      %30 = arith.mulf %28, %29 : vector<8x128xf32>
      %c0_25 = arith.constant 0 : index
      %c0_26 = arith.constant 0 : index
      %31 = vector.load %arg6[%c0_25, %c0_26] : memref<1x128xf32, #tpu.memory_space<vmem>>, vector<1x128xf32>
      %32 = vector.broadcast %31 : vector<1x128xf32> to vector<8x128xf32>
      %33 = arith.mulf %30, %32 : vector<8x128xf32>
      %c0_27 = arith.constant 0 : index
      %c0_28 = arith.constant 0 : index
      %34 = vector.load %arg7[%c0_27, %c0_28] : memref<8x128xf32, #tpu.memory_space<vmem>>, vector<8x128xf32>
      tpu.vector_store %arg7[%c0_27, %c0_28], %33 {strides = array<i32>} : memref<8x128xf32, #tpu.memory_space<vmem>>, vector<8x128xf32>,
    } else {
    }
    return
  }
  func.func @transform_0(%arg0: i32, %arg1: i32) -> (i32, i32) {
    %c0_i32 = arith.constant 0 : i32
    %c0_i32_0 = arith.constant 0 : i32
    return %arg0, %c0_i32 : i32, i32
  }
  func.func @transform_1(%arg0: i32, %arg1: i32) -> (i32, i32) {
    %c0_i32 = arith.constant 0 : i32
    %c0_i32_0 = arith.constant 0 : i32
    return %arg1, %c0_i32 : i32, i32
  }
  func.func @transform_2(%arg0: i32, %arg1: i32) -> (i32, i32) {
    %c0_i32 = arith.constant 0 : i32
    %c0_i32_0 = arith.constant 0 : i32
    return %c0_i32, %arg1 : i32, i32
  }
  func.func @transform_3(%arg0: i32, %arg1: i32) -> (i32, i32) {
    %c0_i32 = arith.constant 0 : i32
    %c0_i32_0 = arith.constant 0 : i32
    return %arg1, %c0_i32 : i32, i32
  }
  func.func @transform_4(%arg0: i32, %arg1: i32) -> (i32, i32) {
    %c0_i32 = arith.constant 0 : i32
    %c0_i32_0 = arith.constant 0 : i32
    %c0_i32_1 = arith.constant 0 : i32
    return %c0_i32, %c0_i32_0 : i32, i32
  }
  func.func @transform_5(%arg0: i32, %arg1: i32) -> (i32, i32) {
    %c0_i32 = arith.constant 0 : i32
    %c0_i32_0 = arith.constant 0 : i32
    return %arg0, %c0_i32 : i32, i32
  }
}

</mosaic_0001>

<bundles_post_ra>
// kernel: neuralhd_apply.1
= control target key start
LH: loop header
LB: loop body
LE: loop exit
PB: predicated region body
PF: predicated region fallthrough
CT: control target
= control target key end

     0   :  { %10 = vsyncpa [#allocation4], 0  ;;  %s842_s0 = inlined_call_operand.vmem [shape: f32[8,128], index: 0, kind: input, shape index: {}]   ;;  %s843_s1 = inlined_call_operand.hbm [shape: f32[256,128], index: 1, kind: input, shape index: {}]   ;;  %s844_s2 = inlined_call_operand.vmem [shape: f32[1,256], index: 2, kind: input, shape index: {}]   ;;  %s845_s3 = inlined_call_operand.hbm [shape: f32[256,128], index: 3, kind: input, shape index: {}]   ;;  %s846_s4 = inlined_call_operand.vmem [shape: f32[1,128], index: 4, kind: input, shape index: {}]   ;;  %s847_s5 = inlined_call_operand.hbm [shape: f32[8,128], index: 5, kind: output, shape index: {}]  }
   0x1   :  { %11 = vsyncpa [#allocation7], 0 }
   0x2   :  { %12 = vsyncpa [#allocation5], 0  ;;  %s710_s18 = smov [#allocation3]  }
   0x3   :  { %s20_s19 = sshll.u32 %s710_s18, 4  ;;  %s21_s19 = int_to_ptr.vmem [resolvable:$true] %s20_s19 }
   0x4   :  { %s652_s20 = scalar_lea.vmem %s21_s19, 4096  ;;  %p657_p1 = scmp.lt.s32.totalorder %s21_s19, %s21_s19 }
   0x5   :  { %p653_p0 = scmp.ne.s32.totalorder %s21_s19, %s652_s20  ;;  %p658_p2 = scmp.lt.s32.totalorder %s652_s20, %s652_s20 }
   0x7   :  { %p659_p3 = por %p658_p2, %p657_p1 }
   0x9   :  { %p660_p4 = pnand %p659_p3, %p653_p0 }
   0xb   :  { %663 = shalt.err (!%p660_p4)
}
   0xc   :  { %s711_s21 = smov 128   ;;  %s712_s22 = smov 8  }
   0xd   :  { %26 = dma.hbm_to_vmem [thread:$0]  %s843_s1, 4096, %s21_s19, [#allocation4], %s711_s21, %s711_s21, %s712_s22  }
   0xe   :  { %s713_s25 = smov [#allocation6]  }
   0xf   :  { %s34_s26 = sshll.u32 %s713_s25, 4  ;;  %s35_s26 = int_to_ptr.vmem [resolvable:$true] %s34_s26 }
  0x10   :  { %s672_s27 = scalar_lea.vmem %s35_s26, 4096  ;;  %p677_p6 = scmp.lt.s32.totalorder %s35_s26, %s35_s26 }
  0x11   :  { %p673_p5 = scmp.ne.s32.totalorder %s35_s26, %s672_s27  ;;  %p678_p7 = scmp.lt.s32.totalorder %s672_s27, %s672_s27 }
  0x13   :  { %p679_p8 = por %p678_p7, %p677_p6 }
  0x15   :  { %p680_p9 = pnand %p679_p8, %p673_p5 }
  0x17   :  { %683 = shalt.err (!%p680_p9)
}
  0x18   :  { %40 = dma.hbm_to_vmem [thread:$0]  %s845_s3, 4096, %s35_s26, [#allocation7], %s711_s21, %s711_s21, %s712_s22  }
  0x19   :  { %704 = dma.done.wait [#allocation4], 4096  }
  0x1a   :  { %705 = vsyncadd [#allocation4], 4294963200 }
  0x1b   :  { %706 = dma.done.wait [#allocation7], 4096  }
  0x1c   :  { %707 = vsyncadd [#allocation7], 4294963200  ;;  %v88_v0 = vld [vmem:[#allocation3 + $0xf8] sm:$0xff]  ;;  %v87_v2 = vld [vmem:[#allocation3 + $0xf0] sm:$0xff]  ;;  %vm54_vm0 = vcmask 7168   ;;  %s722_s7 = smov [#allocation8]  }
  0x1d   :  { %v72_v1 = vld [vmem:[#allocation3 + $0x78] sm:$0xff]  ;;  %543 = vmatprep.subr.mxu0 %v88_v0  ;;  %v71_v3 = vld [vmem:[#allocation3 + $0x70] sm:$0xff]  ;;  %v86_v4 = vld [vmem:[#allocation3 + $0xe8] sm:$0xff]  ;;  %s524_s8 = sshll.u32 %s722_s7, 4  ;;  %s525_s8 = int_to_ptr.vmem [resolvable:$true] %s524_s8 }
  0x1e   :  { %544 = vmatpush3.xpose.msra.mxu0 %v72_v1  ;;  %v70_v5 = vld [vmem:[#allocation3 + $0x68] sm:$0xff]  ;;  %v85_v6 = vld [vmem:[#allocation3 + $0xe0] sm:$0xff]  ;;  %v56_v7 = vld [vmem:[%s842_s0] sm:$0xff]  ;;  %v714_v1 = vmov 0.0   ;;  %s684_s9 = scalar_lea.vmem %s525_s8, 128  ;;  %p689_p11 = scmp.lt.s32.totalorder %s525_s8, %s525_s8 }
  0x1f   :  { %545 = vmatprep.subr.mxu0 %v87_v2  ;;  %v69_v8 = vld [vmem:[#allocation3 + $0x60] sm:$0xff]  ;;  %575 = vmatprep.mubr.f32.mxu0 %v56_v7  ;;  %v84_v9 = vld [vmem:[#allocation3 + $0xd8] sm:$0xff]  ;;  %v83_v11 = vld [vmem:[#allocation3 + $0xd0] sm:$0xff]  ;;  %55 = vst.msk [vmem:[#allocation2] sm:$0xff] %vm54_vm0, %v714_v1  ;;  %p685_p10 = scmp.ne.s32.totalorder %s525_s8, %s684_s9  ;;  %p690_p12 = scmp.lt.s32.totalorder %s684_s9, %s684_s9 }
  0x20   :  { %v68_v10 = vld [vmem:[#allocation3 + $0x58] sm:$0xff]  ;;  %v67_v12 = vld [vmem:[#allocation3 + $0x50] sm:$0xff]  ;;  %v82_v13 = vld [vmem:[#allocation3 + $0xc8] sm:$0xff] }
  0x21   :  { %v66_v14 = vld [vmem:[#allocation3 + $0x48] sm:$0xff]  ;;  %v81_v15 = vld [vmem:[#allocation3 + $0xc0] sm:$0xff]  ;;  %v80_v17 = vld [vmem:[#allocation3 + $0xb8] sm:$0xff]  ;;  %p691_p13 = por %p690_p12, %p689_p11 }
  0x22   :  { %546 = vmatpush3.xpose.msra.mxu0 %v71_v3  ;;  %v65_v16 = vld [vmem:[#allocation3 + $0x40] sm:$0xff]  ;;  %v64_v18 = vld [vmem:[#allocation3 + $0x38] sm:$0xff]  ;;  %v79_v19 = vld [vmem:[#allocation3 + $0xb0] sm:$0xff] }
  0x23   :  { %547 = vmatprep.subr.mxu0 %v86_v4  ;;  %v63_v20 = vld [vmem:[#allocation3 + $0x30] sm:$0xff]  ;;  %v78_v21 = vld [vmem:[#allocation3 + $0xa8] sm:$0xff]  ;;  %v77_v23 = vld [vmem:[#allocation3 + $0xa0] sm:$0xff]  ;;  %p692_p0 = pnand %p691_p13, %p685_p10 }
  0x24   :  { %v62_v22 = vld [vmem:[#allocation3 + $0x28] sm:$0xff]  ;;  %v61_v24 = vld [vmem:[#allocation3 + $0x20] sm:$0xff]  ;;  %v76_v25 = vld [vmem:[#allocation3 + $0x98] sm:$0xff] }
  0x25   :  { %v60_v26 = vld [vmem:[#allocation3 + $0x18] sm:$0xff]  ;;  %v75_v27 = vld [vmem:[#allocation3 + $0x90] sm:$0xff]  ;;  %v74_v29 = vld [vmem:[#allocation3 + $0x88] sm:$0xff] }
  0x26   :  { %548 = vmatpush3.xpose.msra.mxu0 %v70_v5  ;;  %v59_v28 = vld [vmem:[#allocation3 + $0x10] sm:$0xff]  ;;  %v58_v30 = vld [vmem:[#allocation3 + $0x8] sm:$0xff]  ;;  %v73_v31 = vld [vmem:[#allocation3 + $0x80] sm:$0xff] }
  0x27   :  { %549 = vmatprep.subr.mxu0 %v85_v6  ;;  %v57_v32 = vld [vmem:[#allocation3] sm:$0xff]  ;;  %v414_v33 = vld [vmem:[#allocation6 + $0xf8] sm:$0xff]  ;;  %v413_v35 = vld [vmem:[#allocation6 + $0xf0] sm:$0xff] }
  0x28   :  { %577 = vmatprep.subr.mxu1 %v414_v33  ;;  %v398_v34 = vld [vmem:[#allocation6 + $0x78] sm:$0xff]  ;;  %v397_v36 = vld [vmem:[#allocation6 + $0x70] sm:$0xff]  ;;  %v412_v37 = vld [vmem:[#allocation6 + $0xe8] sm:$0xff] }
  0x29   :  { %578 = vmatpush3.msra.mxu1 %v398_v34  ;;  %v396_v38 = vld [vmem:[#allocation6 + $0x68] sm:$0xff]  ;;  %v411_v39 = vld [vmem:[#allocation6 + $0xe0] sm:$0xff]  ;;  %v410_v41 = vld [vmem:[#allocation6 + $0xd8] sm:$0xff] }
  0x2a   :  { %550 = vmatpush3.xpose.msra.mxu0 %v69_v8  ;;  %579 = vmatprep.subr.mxu1 %v413_v35  ;;  %v395_v40 = vld [vmem:[#allocation6 + $0x60] sm:$0xff]  ;;  %v394_v42 = vld [vmem:[#allocation6 + $0x58] sm:$0xff]  ;;  %v409_v43 = vld [vmem:[#allocation6 + $0xd0] sm:$0xff] }
  0x2b   :  { %551 = vmatprep.subr.mxu0 %v84_v9  ;;  %580 = vmatpush3.msra.mxu1 %v397_v36  ;;  %v393_v44 = vld [vmem:[#allocation6 + $0x50] sm:$0xff]  ;;  %v408_v45 = vld [vmem:[#allocation6 + $0xc8] sm:$0xff]  ;;  %v407_v47 = vld [vmem:[#allocation6 + $0xc0] sm:$0xff] }
  0x2c   :  { %581 = vmatprep.subr.mxu1 %v412_v37  ;;  %v392_v46 = vld [vmem:[#allocation6 + $0x48] sm:$0xff]  ;;  %v391_v48 = vld [vmem:[#allocation6 + $0x40] sm:$0xff]  ;;  %v406_v49 = vld [vmem:[#allocation6 + $0xb8] sm:$0xff] }
  0x2d   :  { %582 = vmatpush3.msra.mxu1 %v396_v38  ;;  %v390_v50 = vld [vmem:[#allocation6 + $0x38] sm:$0xff]  ;;  %v405_v51 = vld [vmem:[#allocation6 + $0xb0] sm:$0xff]  ;;  %v404_v53 = vld [vmem:[#allocation6 + $0xa8] sm:$0xff]  ;;  %v720_v38 = vmov 1326507024  }
  0x2e   :  { %552 = vmatpush3.xpose.msra.mxu0 %v68_v10  ;;  %583 = vmatprep.subr.mxu1 %v411_v39  ;;  %v389_v52 = vld [vmem:[#allocation6 + $0x30] sm:$0xff]  ;;  %v388_v54 = vld [vmem:[#allocation6 + $0x28] sm:$0xff]  ;;  %v403_v55 = vld [vmem:[#allocation6 + $0xa0] sm:$0xff] }
  0x2f   :  { %553 = vmatprep.subr.mxu0 %v83_v11  ;;  %584 = vmatpush3.msra.mxu1 %v395_v40  ;;  %v387_v56 = vld [vmem:[#allocation6 + $0x20] sm:$0xff]  ;;  %v402_v57 = vld [vmem:[#allocation6 + $0x98] sm:$0xff]  ;;  %v401_v59 = vld [vmem:[#allocation6 + $0x90] sm:$0xff] }
  0x30   :  { %585 = vmatprep.subr.mxu1 %v410_v41  ;;  %v386_v58 = vld [vmem:[#allocation6 + $0x18] sm:$0xff]  ;;  %v385_v60 = vld [vmem:[#allocation6 + $0x10] sm:$0xff]  ;;  %v400_v61 = vld [vmem:[#allocation6 + $0x88] sm:$0xff] }
  0x31   :  { %586 = vmatpush3.msra.mxu1 %v394_v42  ;;  %v384_v62 = vld [vmem:[#allocation6 + $0x8] sm:$0xff]  ;;  %v399_v63 = vld [vmem:[#allocation6 + $0x80] sm:$0xff] }
  0x32   :  { %554 = vmatpush3.xpose.msra.mxu0 %v67_v12  ;;  %587 = vmatprep.subr.mxu1 %v409_v43  ;;  %v383_v0 = vld [vmem:[#allocation6] sm:$0xff] }
  0x33   :  { %555 = vmatprep.subr.mxu0 %v82_v13  ;;  %588 = vmatpush3.msra.mxu1 %v393_v44 }
  0x34   :  { %589 = vmatprep.subr.mxu1 %v408_v45 }
  0x35   :  { %590 = vmatpush3.msra.mxu1 %v392_v46 }
  0x36   :  { %556 = vmatpush3.xpose.msra.mxu0 %v66_v14  ;;  %591 = vmatprep.subr.mxu1 %v407_v47 }
  0x37   :  { %557 = vmatprep.subr.mxu0 %v81_v15  ;;  %592 = vmatpush3.msra.mxu1 %v391_v48 }
  0x38   :  { %593 = vmatprep.subr.mxu1 %v406_v49 }
  0x39   :  { %594 = vmatpush3.msra.mxu1 %v390_v50 }
  0x3a   :  { %558 = vmatpush3.xpose.msra.mxu0 %v65_v16  ;;  %595 = vmatprep.subr.mxu1 %v405_v51 }
  0x3b   :  { %559 = vmatprep.subr.mxu0 %v80_v17  ;;  %596 = vmatpush3.msra.mxu1 %v389_v52 }
  0x3c   :  { %597 = vmatprep.subr.mxu1 %v404_v53 }
  0x3d   :  { %598 = vmatpush3.msra.mxu1 %v388_v54 }
  0x3e   :  { %560 = vmatpush3.xpose.msra.mxu0 %v64_v18  ;;  %599 = vmatprep.subr.mxu1 %v403_v55 }
  0x3f   :  { %561 = vmatprep.subr.mxu0 %v79_v19  ;;  %600 = vmatpush3.msra.mxu1 %v387_v56 }
  0x40   :  { %601 = vmatprep.subr.mxu1 %v402_v57 }
  0x41   :  { %602 = vmatpush3.msra.mxu1 %v386_v58 }
  0x42   :  { %562 = vmatpush3.xpose.msra.mxu0 %v63_v20  ;;  %603 = vmatprep.subr.mxu1 %v401_v59 }
  0x43   :  { %563 = vmatprep.subr.mxu0 %v78_v21  ;;  %604 = vmatpush3.msra.mxu1 %v385_v60 }
  0x44   :  { %605 = vmatprep.subr.mxu1 %v400_v61 }
  0x45   :  { %606 = vmatpush3.msra.mxu1 %v384_v62 }
  0x46   :  { %564 = vmatpush3.xpose.msra.mxu0 %v62_v22  ;;  %607 = vmatprep.subr.mxu1 %v399_v63  ;;  %v715_v22 = vmov 683565275  }
  0x47   :  { %565 = vmatprep.subr.mxu0 %v77_v23  ;;  %608 = vmatpush3.msra.mxu1 %v383_v0 }
  0x4a   :  { %566 = vmatpush3.xpose.msra.mxu0 %v61_v24 }
  0x4b   :  { %567 = vmatprep.subr.mxu0 %v76_v25  ;;  %v716_v25 = vmov 2475754826  }
  0x4e   :  { %568 = vmatpush3.xpose.msra.mxu0 %v60_v26 }
  0x4f   :  { %569 = vmatprep.subr.mxu0 %v75_v27  ;;  %v717_v27 = vmov 2131351028  }
  0x52   :  { %570 = vmatpush3.xpose.msra.mxu0 %v59_v28 }
  0x53   :  { %571 = vmatprep.subr.mxu0 %v74_v29  ;;  %v718_v29 = vmov 2102212464  }
  0x56   :  { %572 = vmatpush3.xpose.msra.mxu0 %v58_v30 }
  0x57   :  { %573 = vmatprep.subr.mxu0 %v73_v31  ;;  %v719_v31 = vmov 920167782  }
  0x5a   :  { %574 = vmatpush3.xpose.msra.mxu0 %v57_v32 }
  0x5d   :  { %576 = vmatmul.mubr.f32.vlgmr.msra.gmra.mxu0 %v56_v7 }
 0x11d   :  { %v763_v2 = vpop.f32.mrf.mxu0 }
 0x11e   :  { %v160_v3 = vand.u32 2147483647, %v763_v2  ;;  %v163_v4 = vand.u32 2139095040, %v763_v2  ;;  %vm162_vm15 = vcmp.lt.s32.totalorder %v763_v2, 0 }
 0x11f   :  { %v767_v5 = vpop.f32.mrf.mxu0 }
 0x120   :  { %v164_v6 = vshrl.u32 %v163_v4, 23  ;;  %v167_v7 = vand.u32 8388607, %v160_v3  ;;  %v267_v8 = vand.u32 2139095040, %v767_v5  ;;  %v264_v10 = vand.u32 2147483647, %v767_v5 }
 0x122   :  { %v534_v9 = vadd.s32 4294967169, %v164_v6  ;;  %v268_v11 = vshrl.u32 %v267_v8, 23  ;;  %v168_v13 = vor.u32 8388608, %v167_v7  ;;  %v271_v15 = vand.u32 8388607, %v264_v10 }
 0x124   :  { %v170_v12 = vadd.s32 1, %v534_v9  ;;  %v538_v14 = vadd.s32 4294967169, %v268_v11  ;;  %v775_v20 = vshll.u32 %v168_v13, 8  ;;  %v272_v24 = vor.u32 8388608, %v271_v15 }
 0x126   :  { %vm171_vm1 = vcmp.gt.s32.totalorder %v170_v12, 0  ;;  %v274_v17 = vadd.s32 1, %v538_v14  ;;  %v312_v57 = vshll.u32 %v272_v24, 8 }
 0x127   :  { %v172_v16 = vsel %vm171_vm1, %v170_v12, 0  ;;  %vm817_vm1 = vcmp.le.f32.partialorder %v160_v3, 0.7853982 }
 0x128   :  { %v173_v18 = vshrl.u32 %v172_v16, 5  ;;  %v174_v19 = vand.u32 31, %v172_v16  ;;  %vm275_vm2 = vcmp.gt.s32.totalorder %v274_v17, 0 }
 0x129   :  { %v276_v43 = vsel %vm275_vm2, %v274_v17, 0  ;;  %vm266_vm2 = vcmp.lt.s32.totalorder %v767_v5, 0 }
 0x12a   :  { %v175_v21 = vsub.s32 32, %v174_v19  ;;  %v177_v23 = vshll.u32 %v715_v22, %v174_v19  ;;  %v180_v26 = vshll.u32 %v716_v25, %v174_v19  ;;  %v183_v28 = vshll.u32 %v717_v27, %v174_v19 }
 0x12b   :  { %v186_v30 = vshll.u32 %v718_v29, %v174_v19  ;;  %v189_v32 = vshll.u32 %v719_v31, %v174_v19  ;;  %vm192_vm3 = vcmp.lt.s32.totalorder %v173_v18, 1  ;;  %vm194_vm4 = vcmp.lt.s32.totalorder %v173_v18, 3 }
 0x12c   :  { %v178_v33 = vshrl.u32 %v716_v25, %v175_v21  ;;  %v181_v34 = vshrl.u32 %v717_v27, %v175_v21  ;;  %v184_v35 = vshrl.u32 %v718_v29, %v175_v21  ;;  %v176_v36 = vshrl.u32 %v715_v22, %v175_v21 }
 0x12d   :  { %v187_v37 = vshrl.u32 %v719_v31, %v175_v21  ;;  %v190_v39 = vshrl.u32 %v720_v38, %v175_v21  ;;  %vm195_vm5 = vcmp.lt.s32.totalorder %v173_v18, 4  ;;  %v278_v46 = vand.u32 31, %v276_v43 }
 0x12e   :  { %v179_v40 = vor.u32 %v178_v33, %v177_v23  ;;  %v182_v41 = vor.u32 %v181_v34, %v180_v26  ;;  %v185_v42 = vor.u32 %v184_v35, %v183_v28  ;;  %vm193_vm6 = vcmp.lt.s32.totalorder %v173_v18, 2 }
 0x12f   :  { %v188_v44 = vor.u32 %v187_v37, %v186_v30  ;;  %v191_v45 = vor.u32 %v190_v39, %v189_v32  ;;  %v279_v54 = vsub.s32 32, %v278_v46  ;;  %v277_v61 = vshrl.u32 %v276_v43, 5 }
 0x130   :  { %v196_v47 = vsel %vm192_vm3, %v176_v36, %v179_v40  ;;  %v197_v48 = vsel %vm195_vm5, %v185_v42, 2102212464  ;;  %v200_v49 = vsel %vm192_vm3, %v179_v40, %v182_v41  ;;  %v204_v50 = vsel %vm192_vm3, %v182_v41, %v185_v42 }
 0x131   :  { %v198_v51 = vsel %vm194_vm4, %v182_v41, %v197_v48  ;;  %v201_v52 = vsel %vm195_vm5, %v188_v44, 920167782  ;;  %v205_v53 = vsel %vm195_vm5, %v191_v45, 1326507024  ;;  %v281_v4 = vshll.u32 %v715_v22, %v278_v46 }
 0x132   :  { %v202_v55 = vsel %vm194_vm4, %v185_v42, %v201_v52  ;;  %v206_v56 = vsel %vm194_vm4, %v188_v44, %v205_v53  ;;  %v199_v58 = vsel %vm193_vm6, %v196_v47, %v198_v51  ;;  %v282_v6 = vshrl.u32 %v716_v25, %v279_v54 }
 0x133   :  { %v203_v59 = vsel %vm193_vm6, %v200_v49, %v202_v55  ;;  %v207_v60 = vsel %vm193_vm6, %v204_v50, %v206_v56  ;;  %v284_v7 = vshll.u32 %v716_v25, %v278_v46  ;;  %v285_v8 = vshrl.u32 %v717_v27, %v279_v54 }
 0x134   :  { %v787_v62 = vmul.u32.u64.low %v775_v20, %v207_v60  ;;  %v788_v63 = vmul.u32.u64.high %v775_v20, %v207_v60, %v787_v62  ;;  %v791_v0 = vmul.u32.u64.low %v775_v20, %v203_v59  ;;  %v792_v1 = vmul.u32.u64.high %v775_v20, %v203_v59, %v791_v0 }
 0x135   :  { %v287_v9 = vshll.u32 %v717_v27, %v278_v46  ;;  %v288_v11 = vshrl.u32 %v718_v29, %v279_v54  ;;  %v290_v12 = vshll.u32 %v718_v29, %v278_v46  ;;  %v291_v13 = vshrl.u32 %v719_v31, %v279_v54 }
 0x136   :  { %v283_v14 = vor.u32 %v282_v6, %v281_v4  ;;  %v286_v15 = vor.u32 %v285_v8, %v284_v7  ;;  %v293_v16 = vshll.u32 %v719_v31, %v278_v46  ;;  %v294_v17 = vshrl.u32 %v720_v38, %v279_v54 }
 0x137   :  { %v215_v18 = vmul.u32 %v775_v20, %v199_v58  ;;  %vm217_vm7 = vc.u32 %v788_v63, %v791_v0  ;;  %v218_v19 = vadd.s32 1, %v792_v1  ;;  %v289_v21 = vor.u32 %v288_v11, %v287_v9 }
 0x138   :  { %v280_v23 = vshrl.u32 %v715_v22, %v279_v54  ;;  %v292_v24 = vor.u32 %v291_v13, %v290_v12  ;;  %v295_v25 = vor.u32 %v294_v17, %v293_v16  ;;  %vm296_vm8 = vcmp.lt.s32.totalorder %v277_v61, 1 }
 0x139   :  { %v219_v26 = vsel %vm217_vm7, %v218_v19, %v792_v1  ;;  %vm298_vm9 = vcmp.lt.s32.totalorder %v277_v61, 3  ;;  %vm299_vm10 = vcmp.lt.s32.totalorder %v277_v61, 4  ;;  %v304_v27 = vsel %vm296_vm8, %v283_v14, %v286_v15 }
 0x13a   :  { %v220_v28 = vadd.s32 %v219_v26, %v215_v18  ;;  %v301_v29 = vsel %vm299_vm10, %v289_v21, 2102212464  ;;  %v305_v30 = vsel %vm299_vm10, %v292_v24, 920167782  ;;  %v308_v20 = vsel %vm296_vm8, %v286_v15, %v289_v21 }
 0x13b   :  { %vm297_vm11 = vcmp.lt.s32.totalorder %v277_v61, 2  ;;  %v300_v31 = vsel %vm296_vm8, %v280_v23, %v283_v14  ;;  %v306_v32 = vsel %vm298_vm9, %v289_v21, %v305_v30  ;;  %v309_v33 = vsel %vm299_vm10, %v295_v25, 1326507024 }
 0x13c   :  { %v221_v34 = vadd.s32 536870912, %v220_v28  ;;  %v302_v35 = vsel %vm298_vm9, %v286_v15, %v301_v29  ;;  %v307_v36 = vsel %vm297_vm11, %v304_v27, %v306_v32  ;;  %v310_v22 = vsel %vm298_vm9, %v292_v24, %v309_v33 }
 0x13d   :  { %v311_v37 = vsel %vm297_vm11, %v308_v20, %v310_v22  ;;  %v802_v38 = vmul.u32.u64.low %v312_v57, %v307_v36  ;;  %v803_v39 = vmul.u32.u64.high %v312_v57, %v307_v36, %v802_v38  ;;  %v303_v43 = vsel %vm297_vm11, %v300_v31, %v302_v35 }
 0x13e   :  { %v222_v40 = vshrl.u32 %v221_v34, 30  ;;  %v805_v41 = vmul.u32.u64.low %v312_v57, %v311_v37  ;;  %v806_v42 = vmul.u32.u64.high %v312_v57, %v311_v37, %v805_v41  ;;  %v319_v47 = vmul.u32 %v312_v57, %v303_v43 }
 0x13f   :  { %v322_v45 = vadd.s32 1, %v803_v39  ;;  %v216_v60 = vadd.s32 %v791_v0, %v788_v63  ;;  %vm265_vm3 = vcmp.le.f32.partialorder %v264_v10, 0.7853982  ;;  %v370_v41 = vlaneseq }
 0x140   :  { %v223_v44 = vshll.u32 %v222_v40, 30  ;;  %vm321_vm12 = vc.u32 %v806_v42, %v802_v38  ;;  %v320_v18 = vadd.s32 %v802_v38, %v806_v42  ;;  %v246_v30 = vsub.s32 4, %v222_v40 }
 0x141   :  { %v323_v48 = vsel %vm321_vm12, %v322_v45, %v803_v39  ;;  %vm252_vm7 = vweird.f32 %v763_v2  ;;  %vm356_vm11 = vweird.f32 %v767_v5 }
 0x142   :  { %v224_v46 = vsub.s32 %v220_v28, %v223_v44  ;;  %v324_v50 = vadd.s32 %v323_v48, %v319_v47  ;;  %v247_v33 = vsel %vm162_vm15, %v246_v30, %v222_v40  ;;  %v371_v47 = vshrl.u32 %v370_v41, 7 }
 0x143   :  { %v249_v3 = vsel %vm817_vm1, 0, %v247_v33 }
 0x144   :  { %v226_v49 = vsub.s32 0, %v224_v46  ;;  %v325_v52 = vadd.s32 536870912, %v324_v50  ;;  %v253_v38 = vadd.s32 3, %v249_v3 }
 0x146   :  { %v535_v51 = vmin.u32 %v226_v49, %v224_v46  ;;  %v326_v54 = vshrl.u32 %v325_v52, 30  ;;  %v254_v43 = vand.u32 3, %v253_v38  ;;  %v368_v52 = vld [vmem:[%s844_s2] sm:$0x3] }
 0x148   :  { %v228_v53 = vclz %v535_v51  ;;  %v327_v56 = vshll.u32 %v326_v54, 30  ;;  %v350_v36 = vsub.s32 4, %v326_v54  ;;  %vm256_vm4 = vcmp.eq.s32.totalorder %v254_v43, 0 }
 0x149   :  { %vm259_vm5 = vcmp.eq.s32.totalorder %v254_v43, 2  ;;  %vm255_vm6 = vcmp.lt.s32.totalorder %v254_v43, 2 }
 0x14a   :  { %v536_v55 = vadd.s32 4294967294, %v228_v53  ;;  %v328_v58 = vsub.s32 %v324_v50, %v327_v56  ;;  %v351_v39 = vsel %vm266_vm2, %v350_v36, %v326_v54  ;;  %v372_v50 = vsub.s32 0, %v371_v47 }
 0x14b   :  { %v353_v44 = vsel %vm265_vm3, 0, %v351_v39  ;;  %v376_v53 = vsub.s32 1, %v371_v47 }
 0x14c   :  { %vm537_vm13 = vcmp.lt.s32.totalorder %v536_v55, 0  ;;  %v330_v62 = vsub.s32 0, %v328_v58  ;;  %v357_v48 = vadd.s32 3, %v353_v44 }
 0x14d   :  { %v231_v59 = vsel %vm537_vm13, 0, %v536_v55 }
 0x14e   :  { %v232_v61 = vsub.s32 32, %v231_v59  ;;  %v236_v57 = vsub.s32 4294967266, %v231_v59  ;;  %v233_v1 = vshll.u32 %v224_v46, %v231_v59  ;;  %v539_v7 = vmin.u32 %v330_v62, %v328_v58 }
 0x14f   :  { %v358_v51 = vand.u32 3, %v357_v48  ;;  %v373_v59 = vrot.slane %v368_v52, %v372_v50  ;;  %v377_v62 = vrot.slane %v368_v52, %v376_v53 }
 0x150   :  { %v234_v4 = vshrl.u32 %v216_v60, %v232_v61  ;;  %v237_v6 = vadd.s32 127, %v236_v57  ;;  %v332_v11 = vclz %v539_v7 }
 0x151   :  { %vm363_vm8 = vcmp.eq.s32.totalorder %v358_v51, 2  ;;  %vm360_vm9 = vcmp.eq.s32.totalorder %v358_v51, 0  ;;  %vm359_vm10 = vcmp.lt.s32.totalorder %v358_v51, 2 }
 0x152   :  { %v235_v8 = vor.u32 %v234_v4, %v233_v1  ;;  %v238_v9 = vshll.u32 %v237_v6, 23  ;;  %v540_v13 = vadd.s32 4294967294, %v332_v11 }
 0x154   :  { %v239_v12 = vor.u32 4788187, %v238_v9  ;;  %v242_v15 = vcvt.s32.f32 %v235_v8  ;;  %vm541_vm14 = vcmp.lt.s32.totalorder %v540_v13, 0 }
 0x155   :  { %v335_v16 = vsel %vm541_vm14, 0, %v540_v13  ;;  %v487_v13 = vld [vmem:[#allocation2] sm:$0xff] }
 0x156   :  { %v240_v14 = vand.u32 2147483647, %v239_v12  ;;  %v336_v63 = vsub.s32 32, %v335_v16  ;;  %v340_v0 = vsub.s32 4294967266, %v335_v16  ;;  %v337_v21 = vshll.u32 %v328_v58, %v335_v16 }
 0x158   :  { %v243_v17 = vmul.f32 %v242_v15, %v240_v14  ;;  %v338_v23 = vshrl.u32 %v320_v18, %v336_v63  ;;  %v341_v24 = vadd.s32 127, %v340_v0 }
 0x15a   :  { %v244_v19 = vxor.u32 2147483648, %v243_v17  ;;  %v339_v27 = vor.u32 %v338_v23, %v337_v21  ;;  %v342_v28 = vshll.u32 %v341_v24, 23 }
 0x15c   :  { %v245_v26 = vsel %vm162_vm15, %v244_v19, %v243_v17  ;;  %v343_v20 = vor.u32 4788187, %v342_v28  ;;  %v346_v32 = vcvt.s32.f32 %v339_v27  ;;  %v542_v19 = vld [vmem:[%s846_s4] ss:$0 sm:$0xff] }
 0x15d   :  { %v248_v29 = vsel %vm817_vm1, %v763_v2, %v245_v26  ;;  %v721_v2 = vmov 0  }
 0x15e   :  { %634 = vcosq.f32 %v248_v29  ;;  %v344_v31 = vand.u32 2147483647, %v343_v20  ;;  %633 = vset.pattern.permute.xlu0 %v721_v2 }
 0x15f   :  { %636 = vsinq.f32 %v248_v29 }
 0x160   :  { %v347_v34 = vmul.f32 %v346_v32, %v344_v31 }
 0x162   :  { %v348_v35 = vxor.u32 2147483648, %v347_v34 }
 0x164   :  { %v349_v22 = vsel %vm266_vm2, %v348_v35, %v347_v34 }
 0x165   :  { %v352_v37 = vsel %vm265_vm3, %v767_v5, %v349_v22 }
 0x166   :  { %638 = vcosq.f32 %v352_v37 }
 0x167   :  { %640 = vsinq.f32 %v352_v37 }
 0x16b   :  { %v635_v40 = vpop.eup %634 }
 0x16c   :  { %v637_v42 = vpop.eup %636  ;;  %v260_v46 = vxor.u32 2147483648, %v635_v40 }
 0x16d   :  { %v257_v45 = vxor.u32 2147483648, %v637_v42 }
 0x16e   :  { %v261_v10 = vsel %vm259_vm5, %v260_v46, %v637_v42 }
 0x16f   :  { %v258_v49 = vsel %vm256_vm4, %v635_v40, %v257_v45 }
 0x170   :  { %v262_v54 = vsel %vm255_vm6, %v258_v49, %v261_v10 }
 0x171   :  { %v263_v61 = vsel %vm252_vm7, nan, %v262_v54 }
 0x172   :  { %v380_v6 = vsub.f32 %v263_v61, %v373_v59 }
 0x173   :  { %v639_v55 = vpop.eup %638 }
 0x174   :  { %v641_v56 = vpop.eup %640  ;;  %v364_v58 = vxor.u32 2147483648, %v639_v55  ;;  %v488_v9 = vmul.f32 %v380_v6, %v380_v6 }
 0x175   :  { %v361_v60 = vxor.u32 2147483648, %v641_v56 }
 0x176   :  { %v365_v57 = vsel %vm363_vm8, %v364_v58, %v641_v56 }
 0x177   :  { %v362_v1 = vsel %vm360_vm9, %v639_v55, %v361_v60 }
 0x178   :  { %v366_v4 = vsel %vm359_vm10, %v362_v1, %v365_v57 }
 0x179   :  { %v367_v7 = vsel %vm356_vm11, nan, %v366_v4 }
 0x17a   :  { %v381_v8 = vsub.f32 %v367_v7, %v377_v62 }
 0x17c   :  { %479 = vmatprep.mubr.f32.mxu1 %v381_v8  ;;  %v489_v11 = vmul.f32 %v381_v8, %v381_v8 }
 0x17d   :  { %480 = vmatmul.mubr.f32.vlgmr.msra.gmra.mxu1 %v380_v6 }
 0x17e   :  { %v490_v12 = vadd.f32 %v489_v11, %v488_v9 }
 0x180   :  { %491 = vadd.xlane.f32.xlu0 %v490_v12 }
 0x209   :  { %v492_v14 = vpop.xlane.xlu0 %491 }
 0x20a   :  { %v493_v15 = vadd.f32 %v492_v14, %v487_v13 }
 0x20c   :  { %495 = vst.msk [vmem:[#allocation2] sm:$0xff] %vm54_vm0, %v493_v15 }
 0x213   :  { %v499_v16 = vld [vmem:[#allocation2] sm:$0xff] }
 0x214   :  { %v500_v17 = vmax.f32 %v499_v16, 1e-12 }
 0x216   :  { %642 = vrsqrt.f32 %v500_v17 }
 0x223   :  { %v643_v5 = vpop.eup %642 }
 0x224   :  { %505 = vperm.xlu0 %633, %v643_v5  }
 0x23d   :  { %v609_v18 = vpop.f32.mrf.mxu1 }
 0x23f   :  { %v610_v63 = vpop.f32.mrf.mxu1 }
 0x240   :  { %v611_v0 = vadd.f32 %v610_v63, %v609_v18 }
 0x29f   :  { %v506_v21 = vpop.permute.xlu0 %505 }
 0x2a0   :  { %v508_v23 = vmul.f32 %v611_v0, %v506_v21 }
 0x2a2   :  { %v516_v24 = vmul.f32 %v542_v19, %v508_v23 }
 0x2a4   :  { %517 = vst [vmem:[#allocation8] sm:$0xff] %v516_v24 }
 0x2a5   :  { %695 = shalt.err (!%p692_p0)
}
 0x2a6   :  { %527 = dma.vmem_to_hbm [thread:$0]  %s525_s8, 128, %s847_s5, [#allocation5]  }
 0x2a7   :  { %708 = dma.done.wait [#allocation5], 128  }
 0x2a8   :  { %709 = vsyncadd [#allocation5], 4294967168 }
 0x2a9   :  { %531 = vsyncpa [#allocation4], 1 }
 0x2aa   :  { %532 = vsyncpa [#allocation7], 1 }
 0x2ab   :  { %533 = vsyncpa [#allocation5], 1 }

</bundles_post_ra>
